<compile_context>
chip_gen: v5e
topology: v5e:2x2
jax: 0.10.0
libtpu: 0.0.40
codegen_flags: <defaults>
</compile_context>

<pallas_src>
import functools

import jax
import jax.numpy as jnp
import numpy as np
from jax.experimental import pallas as pl
from jax.experimental.pallas import tpu as pltpu

LRELU_SLOPE = 0.1
ACT_DTYPE = jnp.bfloat16     # inter-layer activation dtype in HBM
_MAX_T_TILE = 512            # output rows per grid step (multiple of 64)
_COPY_CHUNK = 64             # scratch staging chunk (bounds vreg pressure)


# ------------------------------------------------------------------------------ kernel
def _conv1d_kernel(xm_ref, xh_ref, w_ref, b_ref, o_ref, xs_ref, acc_ref,
                   *, Kf, t_tile, hbf, apply_lrelu):
    """One (batch, channel-bundle, cout-tile, time-tile) block of a stride-folded Conv1d.

    xm_ref : (1, t_tile, D)     main input window (folded rows), bf16
    xh_ref : (1, hbf, D)        halo rows immediately after the main window, bf16
    w_ref  : (1, Kf, D, Ct)     folded, block-diagonal bundled weights, bf16
    b_ref  : (1, Ct)            bias, f32
    o_ref  : (1, t_tile, Ct)    output tile, bf16
    xs_ref : (t_tile + hbf, D)  VMEM scratch: main + halo staged contiguously
    acc_ref: (t_tile, Ct)       f32 accumulator scratch
    D = stride * Cin_bundle (stride folded into the contraction depth).
    """
    # Stage main window + halo into one contiguous scratch so every tap read below is a
    # plain static unit-stride slice (no strided ds, no dynamic indexing).
    for c0 in range(0, t_tile, _COPY_CHUNK):
        xs_ref[c0:c0 + _COPY_CHUNK, :] = xm_ref[0, c0:c0 + _COPY_CHUNK, :]
    xs_ref[t_tile:t_tile + hbf, :] = xh_ref[0]

    # Kf deep dots (depth 256/512 for the strided layers) instead of K shallow ones.
    acc_ref[...] = jnp.dot(xs_ref[0:t_tile, :], w_ref[0, 0],
                           preferred_element_type=jnp.float32)
    for k in range(1, Kf):                      # static unroll over folded taps
        acc_ref[...] += jnp.dot(xs_ref[k:k + t_tile, :], w_ref[0, k],
                                preferred_element_type=jnp.float32)

    y = acc_ref[...] + b_ref[...]               # f32 epilogue (v5e has no bf16 VPU)
    if apply_lrelu:
        y = jnp.where(y >= 0, y, LRELU_SLOPE * y)
    o_ref[0] = y.astype(o_ref.dtype)            # single f32 -> bf16 cast at the store


# ------------------------------------------------------------------------------ wrapper
def _round_up(x, m):
    return (x + m - 1) // m * m


def _pick_time_tile(t_out):
    """Output rows per grid step: multiple of 64, capped at _MAX_T_TILE.  T_out is padded
    up to NT*t_tile (and sliced afterwards), so arbitrary lengths pipeline cleanly."""
    return min(_MAX_T_TILE, _round_up(max(t_out, 1), 64))


def _halo_rows(Kf):
    """Smallest halo (multiple of 8, divides 64) covering the Kf-1 extra folded rows."""
    for h in (8, 16, 32, 64):
        if h >= Kf - 1:
            return h
    raise ValueError(f"folded tap count {Kf} too large for a 64-row halo")


def _pallas_conv1d(x, layer, *, apply_lrelu):
    """x: (B, T, Cin) channels-last ACT_DTYPE.  Returns (B, T_out, Cout) ACT_DTYPE."""
    B, T, Cin = x.shape
    K, s, p, Kf = layer["K"], layer["stride"], layer["pad"], layer["Kf"]
    NB, cin_b, depth = layer["nb"], layer["cin_b"], layer["depth"]
    NCT, cout_tile, cout_b = layer["nct"], layer["cout_tile"], layer["cout_b"]
    assert Cin == NB * cin_b, (Cin, NB, cin_b)

    T_out = (T + 2 * p - K) // s + 1
    t_tile = _pick_time_tile(T_out)
    NT = -(-T_out // t_tile)
    hbf = _halo_rows(Kf)
    T_f = NT * t_tile + hbf                 # folded rows incl. the last tile's halo

    # time padding: conv left pad + zeros on the right for full tiles + halo
    right = T_f * s - T - p
    assert right >= p, (right, p)
    x = jnp.pad(x, ((0, 0), (p, right), (0, 0)))

    # fold the conv stride into the channel (contraction) dimension
    if s > 1:
        if NB > 1:
            # bundle-major reorder so each bundle's folded channels are contiguous
            # (one extra copy of this activation; only convs[3] and convs[4]).
            x = (x.reshape(B, T_f, s, NB, cin_b)
                   .transpose(0, 1, 3, 2, 4)
                   .reshape(B, T_f, NB * depth))
        else:
            x = x.reshape(B, T_f, depth)    # free row-major reshape

    kernel = functools.partial(_conv1d_kernel, Kf=Kf, t_tile=t_tile, hbf=hbf,
                               apply_lrelu=apply_lrelu)

    out = pl.pallas_call(
        kernel,
        out_shape=jax.ShapeDtypeStruct((B, NT * t_tile, NB * cout_b), ACT_DTYPE),
        grid=(B, NB, NCT, NT),              # time innermost -> weights stay resident
        in_specs=[
            # main window: one time tile of one bundle (VMEM bounded, independent of T)
            pl.BlockSpec((1, t_tile, depth), lambda b, nb, ct, t: (b, t, nb)),
            # halo: the hbf folded rows right after the main window
            pl.BlockSpec((1, hbf, depth),
                         lambda b, nb, ct, t: (b, (t + 1) * (t_tile // hbf), nb)),
            # weights: block index constant along t -> fetched once per (nb, ct)
            pl.BlockSpec((1, Kf, depth, cout_tile),
                         lambda b, nb, ct, t: (nb, 0, 0, ct)),
            pl.BlockSpec((1, cout_tile), lambda b, nb, ct, t: (0, nb * NCT + ct)),
        ],
        out_specs=pl.BlockSpec((1, t_tile, cout_tile),
                               lambda b, nb, ct, t: (b, t, nb * NCT + ct)),
        scratch_shapes=[
            pltpu.VMEM((t_tile + hbf, depth), ACT_DTYPE),
            pltpu.VMEM((t_tile, cout_tile), jnp.float32),
        ],
        compiler_params=pltpu.CompilerParams(
            dimension_semantics=("parallel",) * 4,
            vmem_limit_bytes=48 * 1024 * 1024,   # headroom; actual use < 10 MiB/step
        ),
    )(x, x, layer["w"], layer["bias"])

    return out[:, :T_out, :layer["cout"]]


# ------------------------------------------------------------------------------ params
# (Cin, Cout, K, stride, groups, padding) for the 7 convs + conv_post
_CONV_CFGS = [
    (1, 128, 15, 1, 1, 7),
    (128, 128, 41, 2, 4, 20),
    (128, 256, 41, 2, 16, 20),
    (256, 512, 41, 4, 16, 20),
    (512, 1024, 41, 4, 16, 20),
    (1024, 1024, 41, 1, 16, 20),
    (1024, 1024, 5, 1, 1, 2),
]
_POST_CFG = (1024, 1, 3, 1, 1, 1)


def init_params(key):
    """Raw PyTorch-layout params: (w (Cout,Cin_g,K), b (Cout,), stride, padding, groups)."""
    params = {"convs": [], "conv_post": None}
    for cfg in _CONV_CFGS + [_POST_CFG]:
        cin, cout, k, stride, groups, padding = cfg
        cin_g = cin // groups
        key, kw, kb = jax.random.split(key, 3)
        scale = 1.0 / np.sqrt(cin_g * k)
        w = jax.random.normal(kw, (cout, cin_g, k), jnp.float32) * scale
        b = jax.random.normal(kb, (cout,), jnp.float32) * scale
        entry = (w, b, stride, padding, groups)
        if cfg is _POST_CFG:
            params["conv_post"] = entry
        else:
            params["convs"].append(entry)
    return params


def _pick_group_fusion(groups, cin_g, cout_g, cin, cout):
    """Smallest number of fused groups with lane-aligned (mult-of-128 or full) blocks.
    Minimizing n_g minimizes the block-diagonal overcompute factor (= n_g)."""
    for n_g in range(1, groups + 1):
        if groups % n_g:
            continue
        cin_b, cout_b = n_g * cin_g, n_g * cout_g
        cin_ok = (cin_b % 128 == 0) or (cin_b == cin)
        cout_ok = (cout_b % 128 == 0) or (cout_b == cout)
        if cin_ok and cout_ok:
            return n_g
    return groups


def _prepare_layer(w, b, stride, padding, groups, *, im2col_input=False):
    """Pack one Conv1d into the stride-folded, bundled block-diagonal bf16 layout."""
    w = np.asarray(jax.device_get(w), np.float32)   # (Cout, Cin_g, K)
    b = np.asarray(jax.device_get(b), np.float32)   # (Cout,)
    cout, cin_g, K = w.shape
    im2col = None
    if im2col_input:
        # single-channel input: fold the K taps into input channels on the host so the
        # kernel does one dense (t_tile, 16) x (16, 128) MXU matmul.
        assert groups == 1 and cin_g == 1
        cin_new = _round_up(K, 8)
        im2col = dict(K=K, stride=stride, pad=padding, cin=cin_new)
        w_new = np.zeros((cout, cin_new, 1), np.float32)
        w_new[:, :K, 0] = w[:, 0, :]
        w = w_new
        cout, cin_g, K = w.shape
        stride, padding = 1, 0

    cin = cin_g * groups
    cout_g = cout // groups
    n_g = _pick_group_fusion(groups, cin_g, cout_g, cin, cout)
    nb = groups // n_g
    cin_b, cout_b = n_g * cin_g, n_g * cout_g
    Kf = (K + stride - 1) // stride
    depth = stride * cin_b                           # folded contraction depth

    cout_b_pad = _round_up(cout_b, 128)              # conv_post: 1 -> 128 (lane-dense)
    if cout_b_pad != cout_b:
        assert nb == 1
    cout_tile = min(cout_b_pad, 256)
    assert cout_b_pad % cout_tile == 0
    nct = cout_b_pad // cout_tile

    # bundled, stride-folded, block-diagonal weight: (NB, Kf, depth, Cout_b_pad)
    wb = np.zeros((nb, Kf, depth, cout_b_pad), np.float32)
    for ib in range(nb):
        for j in range(n_g):
            g = ib * n_g + j
            wg = w[g * cout_g:(g + 1) * cout_g]      # (cout_g, cin_g, K)
            for k in range(K):
                kf, r = divmod(k, stride)
                wb[ib, kf,
                   r * cin_b + j * cin_g: r * cin_b + (j + 1) * cin_g,
                   j * cout_g:(j + 1) * cout_g] = wg[:, :, k].T

    bias = np.zeros((1, nb * cout_b_pad), np.float32)
    b_r = b.reshape(nb, cout_b)
    for ib in range(nb):
        bias[0, ib * cout_b_pad: ib * cout_b_pad + cout_b] = b_r[ib]

    return dict(
        w=jnp.asarray(wb, jnp.bfloat16),
        bias=jnp.asarray(bias, jnp.float32),
        K=K, Kf=Kf, stride=stride, pad=padding,
        cin=cin, cout=cout, cin_b=cin_b, cout_b=cout_b_pad,
        depth=depth, nb=nb, nct=nct, cout_tile=cout_tile,
        im2col=im2col,
    )


def prepare_params(raw):
    packed = {"convs": [], "conv_post": None}
    for i, entry in enumerate(raw["convs"]):
        packed["convs"].append(_prepare_layer(*entry, im2col_input=(i == 0)))
    packed["conv_post"] = _prepare_layer(*raw["conv_post"])
    return packed


# ------------------------------------------------------------------------------ model
def _im2col_waveform(x1, meta):
    """(B, T) single-channel waveform -> (B, T_out, cin) tap-major im2col columns."""
    K, s, p, cin = meta["K"], meta["stride"], meta["pad"], meta["cin"]
    xp = jnp.pad(x1, ((0, 0), (p, p)))
    T_out = (x1.shape[1] + 2 * p - K) // s + 1
    cols = [xp[:, k: k + (T_out - 1) * s + 1: s] for k in range(K)]
    im = jnp.stack(cols, axis=-1)                    # (B, T_out, K)
    if cin > K:
        im = jnp.pad(im, ((0, 0), (0, 0), (0, cin - K)))
    return im.astype(ACT_DTYPE)


def discriminator_s_forward(params, x, *, torch_layout_fmaps=False):
    """x: (B, 1, T) like PyTorch NCW.  Returns (out, fmap).

    fmap entries are channels-last (B, T, C) by default (avoids a full per-layer HBM
    transpose; feature-matching losses are elementwise so this is equivalent).  Set
    torch_layout_fmaps=True to get torch's (B, C, T).
    """
    fmap = []
    layers = params["convs"]
    h = _im2col_waveform(x[:, 0, :].astype(jnp.float32), layers[0]["im2col"])
    for layer in layers:
        h = _pallas_conv1d(h, layer, apply_lrelu=True)
        fmap.append(h)
    h = _pallas_conv1d(h, params["conv_post"], apply_lrelu=False)
    fmap.append(h)                                   # (B, T', 1)
    out = h[:, :, 0].astype(jnp.float32)             # == torch.flatten(x, 1, -1)
    if torch_layout_fmaps:
        fmap = [jnp.transpose(f, (0, 2, 1)) for f in fmap]
    return out, fmap


# --------------------------------------------------------------------------- reference
def _ref_conv1d(x, w, b, stride, padding, groups):
    y = jax.lax.conv_general_dilated(
        x, w, window_strides=(stride,), padding=[(padding, padding)],
        dimension_numbers=("NCH", "OIH", "NCH"), feature_group_count=groups,
    )
    return y + b[None, :, None]


def ref_forward(params, x):
    fmap = []
    h = x
    for (w, b, s, p, g) in params["convs"]:
        h = _ref_conv1d(h, w, b, s, p, g)
        h = jnp.where(h >= 0, h, LRELU_SLOPE * h)
        fmap.append(h)
    w, b, s, p, g = params["conv_post"]
    h = _ref_conv1d(h, w, b, s, p, g)
    fmap.append(h)
    return h.reshape(h.shape[0], -1), fmap


# -------------------------------------------------------------------------------- main
if __name__ == "__main__":
    key = jax.random.PRNGKey(0)
    key, kx = jax.random.split(key)
    raw_params = init_params(key)
    packed_params = prepare_params(raw_params)

    B, T = 2, 256
    x = jax.random.normal(kx, (B, 1, T), jnp.float32)

    out, fmap = discriminator_s_forward(packed_params, x)
    out = jax.block_until_ready(out)
    fmap = [jax.block_until_ready(f) for f in fmap]

    # sanity check against a pure-JAX f32 reference (loose tol: bf16 weights+activations)
    ref_out, ref_fmap = ref_forward(raw_params, x)
    ref_out = jax.block_until_ready(ref_out)

    def _check(a, b, name):
        a = np.asarray(a, np.float32)
        b = np.asarray(b, np.float32)
        assert a.shape == b.shape, (name, a.shape, b.shape)
        err = float(np.max(np.abs(a - b)))
        tol = 5e-2 * (1.0 + float(np.max(np.abs(b))))
        assert err <= tol, f"{name}: max err {err} > tol {tol}"

    _check(out, ref_out, "out")
    for i, (f, rf) in enumerate(zip(fmap, ref_fmap)):
        rf = np.transpose(np.asarray(rf, np.float32), (0, 2, 1))   # -> channels-last
        _check(f, rf, f"fmap[{i}]")

    print("KERNEL_OK")
</pallas_src>

<mosaic_0001>
module attributes {stable_mosaic.version = 11 : i64} {
  func.func @_conv1d_kernel(%arg0: i32, %arg1: i32, %arg2: i32, %arg3: i32, %arg4: memref<1x256x16xbf16, #tpu.memory_space<vmem>>, %arg5: memref<1x8x16xbf16, #tpu.memory_space<vmem>>, %arg6: memref<1x1x16x128xbf16, #tpu.memory_space<vmem>>, %arg7: memref<1x128xf32, #tpu.memory_space<vmem>>, %arg8: memref<1x256x128xbf16, #tpu.memory_space<vmem>>, %arg9: memref<264x16xbf16, #tpu.memory_space<vmem>>, %arg10: memref<256x128xf32, #tpu.memory_space<vmem>>) attributes {dimension_semantics = [#tpu.dimension_semantics<parallel>, #tpu.dimension_semantics<parallel>, #tpu.dimension_semantics<parallel>, #tpu.dimension_semantics<parallel>], iteration_bounds = array<i64: 2, 1, 1, 1>, scalar_prefetch = 0 : i64, scratch_operands = 2 : i64, tpu.core_type = #tpu.core_type<tc>, window_params = [{transform_indices = @transform_0, window_bounds = array<i64: 1, 256, 16>}, {transform_indices = @transform_1, window_bounds = array<i64: 1, 8, 16>}, {transform_indices = @transform_2, window_bounds = array<i64: 1, 1, 16, 128>}, {transform_indices = @transform_3, window_bounds = array<i64: 1, 128>}, {transform_indices = @transform_4, window_bounds = array<i64: 1, 256, 128>}]} {
    %c0 = arith.constant 0 : index
    %c0_0 = arith.constant 0 : index
    %c0_1 = arith.constant 0 : index
    %0 = vector.load %arg4[%c0, %c0_0, %c0_1] : memref<1x256x16xbf16, #tpu.memory_space<vmem>>, vector<1x64x16xbf16>
    %1 = vector.shape_cast %0 : vector<1x64x16xbf16> to vector<64x16xbf16>
    %c0_2 = arith.constant 0 : index
    %c0_3 = arith.constant 0 : index
    %2 = vector.load %arg9[%c0_2, %c0_3] : memref<264x16xbf16, #tpu.memory_space<vmem>>, vector<64x16xbf16>
    tpu.vector_store %arg9[%c0_2, %c0_3], %1 {strides = array<i32>} : memref<264x16xbf16, #tpu.memory_space<vmem>>, vector<64x16xbf16>,
    %c0_4 = arith.constant 0 : index
    %c64 = arith.constant 64 : index
    %c0_5 = arith.constant 0 : index
    %3 = vector.load %arg4[%c0_4, %c64, %c0_5] : memref<1x256x16xbf16, #tpu.memory_space<vmem>>, vector<1x64x16xbf16>
    %4 = vector.shape_cast %3 : vector<1x64x16xbf16> to vector<64x16xbf16>
    %c64_6 = arith.constant 64 : index
    %c0_7 = arith.constant 0 : index
    %5 = vector.load %arg9[%c64_6, %c0_7] : memref<264x16xbf16, #tpu.memory_space<vmem>>, vector<64x16xbf16>
    tpu.vector_store %arg9[%c64_6, %c0_7], %4 {strides = array<i32>} : memref<264x16xbf16, #tpu.memory_space<vmem>>, vector<64x16xbf16>,
    %c0_8 = arith.constant 0 : index
    %c128 = arith.constant 128 : index
    %c0_9 = arith.constant 0 : index
    %6 = vector.load %arg4[%c0_8, %c128, %c0_9] : memref<1x256x16xbf16, #tpu.memory_space<vmem>>, vector<1x64x16xbf16>
    %7 = vector.shape_cast %6 : vector<1x64x16xbf16> to vector<64x16xbf16>
    %c128_10 = arith.constant 128 : index
    %c0_11 = arith.constant 0 : index
    %8 = vector.load %arg9[%c128_10, %c0_11] : memref<264x16xbf16, #tpu.memory_space<vmem>>, vector<64x16xbf16>
    tpu.vector_store %arg9[%c128_10, %c0_11], %7 {strides = array<i32>} : memref<264x16xbf16, #tpu.memory_space<vmem>>, vector<64x16xbf16>,
    %c0_12 = arith.constant 0 : index
    %c192 = arith.constant 192 : index
    %c0_13 = arith.constant 0 : index
    %9 = vector.load %arg4[%c0_12, %c192, %c0_13] : memref<1x256x16xbf16, #tpu.memory_space<vmem>>, vector<1x64x16xbf16>
    %10 = vector.shape_cast %9 : vector<1x64x16xbf16> to vector<64x16xbf16>
    %c192_14 = arith.constant 192 : index
    %c0_15 = arith.constant 0 : index
    %11 = vector.load %arg9[%c192_14, %c0_15] : memref<264x16xbf16, #tpu.memory_space<vmem>>, vector<64x16xbf16>
    tpu.vector_store %arg9[%c192_14, %c0_15], %10 {strides = array<i32>} : memref<264x16xbf16, #tpu.memory_space<vmem>>, vector<64x16xbf16>,
    %c0_16 = arith.constant 0 : index
    %c0_17 = arith.constant 0 : index
    %c0_18 = arith.constant 0 : index
    %12 = vector.load %arg5[%c0_16, %c0_17, %c0_18] : memref<1x8x16xbf16, #tpu.memory_space<vmem>>, vector<1x8x16xbf16>
    %13 = vector.shape_cast %12 : vector<1x8x16xbf16> to vector<8x16xbf16>
    %c256 = arith.constant 256 : index
    %c0_19 = arith.constant 0 : index
    %14 = vector.load %arg9[%c256, %c0_19] : memref<264x16xbf16, #tpu.memory_space<vmem>>, vector<8x16xbf16>
    tpu.vector_store %arg9[%c256, %c0_19], %13 {strides = array<i32>} : memref<264x16xbf16, #tpu.memory_space<vmem>>, vector<8x16xbf16>,
    %c0_20 = arith.constant 0 : index
    %c0_21 = arith.constant 0 : index
    %15 = vector.load %arg9[%c0_20, %c0_21] : memref<264x16xbf16, #tpu.memory_space<vmem>>, vector<256x16xbf16>
    %c0_22 = arith.constant 0 : index
    %c0_23 = arith.constant 0 : index
    %c0_24 = arith.constant 0 : index
    %c0_25 = arith.constant 0 : index
    %16 = vector.load %arg6[%c0_22, %c0_23, %c0_24, %c0_25] : memref<1x1x16x128xbf16, #tpu.memory_space<vmem>>, vector<1x1x16x128xbf16>
    %17 = vector.shape_cast %16 : vector<1x1x16x128xbf16> to vector<16x128xbf16>
    %cst = arith.constant dense<0.000000e+00> : vector<256x128xf32>
    %18 = tpu.matmul %15, %17, %cst {dimension_numbers = #tpu.dot_dimension_numbers<[1], [0], [0], [1], [0, 0, 1, 1], [], []>} : vector<256x16xbf16>, vector<16x128xbf16>, vector<256x128xf32> -> vector<256x128xf32>
    %c0_26 = arith.constant 0 : index
    %c0_27 = arith.constant 0 : index
    %19 = vector.load %arg10[%c0_26, %c0_27] : memref<256x128xf32, #tpu.memory_space<vmem>>, vector<256x128xf32>
    tpu.vector_store %arg10[%c0_26, %c0_27], %18 {strides = array<i32>} : memref<256x128xf32, #tpu.memory_space<vmem>>, vector<256x128xf32>,
    %c0_28 = arith.constant 0 : index
    %c0_29 = arith.constant 0 : index
    %20 = vector.load %arg10[%c0_28, %c0_29] : memref<256x128xf32, #tpu.memory_space<vmem>>, vector<256x128xf32>
    %c0_30 = arith.constant 0 : index
    %c0_31 = arith.constant 0 : index
    %21 = vector.load %arg7[%c0_30, %c0_31] : memref<1x128xf32, #tpu.memory_space<vmem>>, vector<1x128xf32>
    %22 = vector.broadcast %21 : vector<1x128xf32> to vector<256x128xf32>
    %23 = arith.addf %20, %22 : vector<256x128xf32>
    %cst_32 = arith.constant 0.000000e+00 : f32
    %24 = vector.broadcast %cst_32 : f32 to vector<256x128xf32>
    %25 = arith.cmpf oge, %23, %24 : vector<256x128xf32>
    %cst_33 = arith.constant 1.000000e-01 : f32
    %26 = vector.broadcast %cst_33 : f32 to vector<256x128xf32>
    %27 = arith.mulf %26, %23 : vector<256x128xf32>
    %28 = arith.select %25, %23, %27 : vector<256x128xi1>, vector<256x128xf32>
    %29 = arith.truncf %28 : vector<256x128xf32> to vector<256x128xbf16>
    %c0_34 = arith.constant 0 : index
    %c0_35 = arith.constant 0 : index
    %c0_36 = arith.constant 0 : index
    %30 = vector.load %arg8[%c0_34, %c0_35, %c0_36] : memref<1x256x128xbf16, #tpu.memory_space<vmem>>, vector<1x256x128xbf16>
    %31 = vector.shape_cast %30 : vector<1x256x128xbf16> to vector<256x128xbf16>
    %32 = vector.shape_cast %29 : vector<256x128xbf16> to vector<1x256x128xbf16>
    tpu.vector_store %arg8[%c0_34, %c0_35, %c0_36], %32 {strides = array<i32>} : memref<1x256x128xbf16, #tpu.memory_space<vmem>>, vector<1x256x128xbf16>,
    return
  }
  func.func @transform_0(%arg0: i32, %arg1: i32, %arg2: i32, %arg3: i32) -> (i32, i32, i32) {
    %c0_i32 = arith.constant 0 : i32
    return %arg0, %arg3, %arg1 : i32, i32, i32
  }
  func.func @transform_1(%arg0: i32, %arg1: i32, %arg2: i32, %arg3: i32) -> (i32, i32, i32) {
    %c1_i32 = arith.constant 1 : i32
    %0 = arith.addi %arg3, %c1_i32 : i32
    %c32_i32 = arith.constant 32 : i32
    %1 = arith.muli %0, %c32_i32 : i32
    %c0_i32 = arith.constant 0 : i32
    return %arg0, %1, %arg1 : i32, i32, i32
  }
  func.func @transform_2(%arg0: i32, %arg1: i32, %arg2: i32, %arg3: i32) -> (i32, i32, i32, i32) {
    %c0_i32 = arith.constant 0 : i32
    %c0_i32_0 = arith.constant 0 : i32
    %c0_i32_1 = arith.constant 0 : i32
    return %arg1, %c0_i32, %c0_i32_0, %arg2 : i32, i32, i32, i32
  }
  func.func @transform_3(%arg0: i32, %arg1: i32, %arg2: i32, %arg3: i32) -> (i32, i32) {
    %c1_i32 = arith.constant 1 : i32
    %0 = arith.muli %arg1, %c1_i32 : i32
    %1 = arith.addi %0, %arg2 : i32
    %c0_i32 = arith.constant 0 : i32
    %c0_i32_0 = arith.constant 0 : i32
    return %c0_i32, %1 : i32, i32
  }
  func.func @transform_4(%arg0: i32, %arg1: i32, %arg2: i32, %arg3: i32) -> (i32, i32, i32) {
    %c1_i32 = arith.constant 1 : i32
    %0 = arith.muli %arg1, %c1_i32 : i32
    %1 = arith.addi %0, %arg2 : i32
    %c0_i32 = arith.constant 0 : i32
    return %arg0, %arg3, %1 : i32, i32, i32
  }
}

</mosaic_0001>

<bundles_post_ra>
// kernel: tpu_custom_call.1
= control target key start
LH: loop header
LB: loop body
LE: loop exit
PB: predicated region body
PF: predicated region fallthrough
CT: control target
= control target key end

     0   :  { %9 = vsyncpa [#allocation5], 0  ;;  %s1762_s0 = inlined_call_operand.vmem [shape: bf16[2,264,16], index: 0, kind: input, shape index: {}]   ;;  %s1763_s1 = inlined_call_operand.vmem [shape: bf16[2,264,16], index: 1, kind: input, shape index: {}]   ;;  %s1764_s2 = inlined_call_operand.vmem [shape: bf16[1,1,16,128], index: 2, kind: input, shape index: {}]   ;;  %s1765_s3 = inlined_call_operand.vmem [shape: f32[1,128], index: 3, kind: input, shape index: {}]   ;;  %s1766_s4 = inlined_call_operand.hbm [shape: bf16[2,256,128], index: 4, kind: output, shape index: {}]  }
   0x1   :  { %11 = vsyncpa [#allocation5 + $0x1], 0  ;;  %s1520_s15 = smov 0   ;;  %s1522_s16 = smov 0  }
   0x2   :  { %s1524_s17 = smov 0   ;;  %s1526_s18 = smov 0  }
   0x3   :  { %s1528_s1 = smov 0   ;;  %s1530_s19 = smov 0  }
   0x4 LB: > { %s1135_s20 = sadd.s32 4294967295, %s1491_s19   ;;  %s1136_s21 = sadd.s32 4294967294, %s1491_s19   ;;  %s1491_s19 = sphi %s1530_s19, %s17_s19   ;;  %s1487_s1 = sphi %s1528_s1, %s1773_s1   ;;  %s1483_s18 = sphi %s1526_s18, %s1772_s18   ;;  %s1479_s17 = sphi %s1524_s17, %s1771_s17   ;;  %s1475_s16 = sphi %s1522_s16, %s1770_s16   ;;  %s1471_s15 = sphi %s1520_s15, %s1769_s15  }
   0x5   : > { %s43_s22 = sadd.s32 1, %s1487_s1  ;;  %s176_s23 = sadd.s32 1, %s1479_s17 }
   0x6   : > { %p45_p0 = scmp.ge.s32.totalorder %s43_s22, 2  ;;  %p186_p1 = scmp.ne.s32.totalorder %s1479_s17, %s1475_s16 }
   0x7   : > { %p187_p2 = scmp.eq.s32.totalorder %s1135_s20, 1  ;;  %p192_p3 = scmp.ne.s32.totalorder %s1475_s16, %s1471_s15 }
   0x8   : > { %s1775_s22 = smov (%p45_p0, %s43_s22), 0  ;;  %p193_p5 = scmp.eq.s32.totalorder %s1136_s21, 1 }
   0x9   : > { %p1560_p4 = por %p187_p2, %p186_p1  ;;  %s169_s25 = ssub.s32 %s1487_s1, %s1775_s22 }
   0xa   : > { %p1141_p6 = scmp.ge.s32.totalorder %s1491_s19, 1  ;;  %p174_p7 = scmp.eq.s32.totalorder %s169_s25, 0 }
   0xb   : > { %p1567_p8 = por %p193_p5, %p192_p3  ;;  %p272_p9 = scmp.lt.s32.totalorder %s1491_s19, 3 }
   0xc   : > { %s1573_s27 = scalar_select %p174_p7, %s1479_s17, %s176_s23  }
   0xd   : > { %p273_p10 = pnand %p1141_p6, %p272_p9 }
   0xe   : > { %p339_p11 = scmp.lt.s32.totalorder (!%p273_p10), %s1483_s18, 1  ;;  %s331_s11 = sand.u32 (!%p273_p10), 1, %s1475_s16  }
   0xf   : > { %276 = sbr.rel (%p273_p10) target bundleno = 240 (0xf0), region = 36  ;;  %s1142_s12 = sshll.u32 (!%p273_p10), %s331_s11, 7 }
  0x10   : > { %s1678_s13 = scalar_lea.vmem (!%p273_p10), [#allocation4], %s1142_s12  ;;  %s1253_s14 = sshll.u32 (!%p273_p10), %s1483_s18, 7 }
  0x11   : > { %s987_s23 = scalar_lea.hbm (!%p273_p10), %s1766_s4, %s1253_s14  ;;  %s972_s28 = scalar_lea.sflag (!%p273_p10), [#allocation5], %s331_s11 }
  0x12   : > { %s990_s25 = sshll.u32 (!%p273_p10), %s987_s23, 4  ;;  %s1433_s7 = scalar_lea.hbm (!%p273_p10), %s1766_s4, 256  ;;  %s991_s25 = int_to_ptr.hbm [resolvable:$true] %s990_s25 }
  0x13   : > { %s1427_s29 = sshra.s32 (!%p273_p10), %s991_s25, 4  ;;  %s1428_s29 = int_to_ptr.hbm [resolvable:$true] %s1427_s29 }
  0x14   : > { %v1252_v0 = vld [vmem:[%s1764_s2] sm:$0xff]  ;;  %s340_s30 = scalar_select %p339_p11, %s1483_s18, 1  ;;  %vm394_vm0 = vcmask 125952   ;;  %vm573_vm1 = vcmask 130048  }
  0x15   : > { %629 = vmatpush.bf16.msra.mxu0 %v1252_v0  ;;  %1349 = vmatpush.bf16.msra.mxu1 %v1252_v0  ;;  %v1668_v50 = vld [vmem:[%s1765_s3] ss:$0 sm:$0xff]  ;;  %s988_s18 = sshll.u32 %s1678_s13, 4  ;;  %p1434_p1 = scmp.lt.s32.totalorder %s1428_s29, %s1766_s4  ;;  %s989_s18 = int_to_ptr.vmem [resolvable:$true] %s988_s18 }
  0x16   : > { %1350 = vmatpush.bf16.msra.mxu2 %v1252_v0  ;;  %1351 = vmatpush.bf16.msra.mxu3 %v1252_v0  ;;  %s1352_s5 = smul.u32 132, %s340_s30  ;;  %s1429_s30 = scalar_lea.hbm %s1428_s29, 128 }
  0x17   : > { %p1430_p12 = scmp.ne.s32.totalorder %s1428_s29, %s1429_s30  ;;  %p1435_p2 = scmp.lt.s32.totalorder %s1433_s7, %s1429_s30 }
  0x18   : > { %s1583_s8 = scalar_lea.vmem %s1762_s0, %s1352_s5 }
  0x19   : > { %v386_v1 = vld [vmem:[%s1583_s8] sm:$0xf]  ;;  %v387_v2 = vld [vmem:[%s1583_s8 + $0x4] sm:$0xf]  ;;  %v388_v9 = vld [vmem:[%s1583_s8 + $0x8] sm:$0xf]  ;;  %p1431_p13 = pnand %p1430_p12, %p1560_p4  ;;  %p1436_p3 = por %p1435_p2, %p1434_p1 }
  0x1a   : > { %395 = vst.msk [vmem:[#allocation2] sm:$0xf] %vm394_vm0, %v386_v1  ;;  %v403_v3 = vld [vmem:[%s1583_s8 + $0x20] sm:$0xf]  ;;  %v404_v4 = vld [vmem:[%s1583_s8 + $0x24] sm:$0xf] }
  0x1b   : > { %396 = vst.msk [vmem:[#allocation2 + $0x4] sm:$0xf] %vm394_vm0, %v387_v2  ;;  %v419_v5 = vld [vmem:[%s1583_s8 + $0x40] sm:$0xf]  ;;  %v420_v6 = vld [vmem:[%s1583_s8 + $0x44] sm:$0xf]  ;;  %p1432_p0 = pneg %p1431_p13 }
  0x1c   : > { %411 = vst.msk [vmem:[#allocation2 + $0x20] sm:$0xf] %vm394_vm0, %v403_v3  ;;  %v435_v7 = vld [vmem:[%s1583_s8 + $0x60] sm:$0xf]  ;;  %v436_v8 = vld [vmem:[%s1583_s8 + $0x64] sm:$0xf] }
  0x1d   : > { %412 = vst.msk [vmem:[#allocation2 + $0x24] sm:$0xf] %vm394_vm0, %v404_v4  ;;  %v389_v10 = vld [vmem:[%s1583_s8 + $0xc] sm:$0xf]  ;;  %v405_v12 = vld [vmem:[%s1583_s8 + $0x28] sm:$0xf]  ;;  %p1437_p5 = pnand %p1436_p3, %p1432_p0 }
  0x1e   : > { %427 = vst.msk [vmem:[#allocation2 + $0x40] sm:$0xf] %vm394_vm0, %v419_v5  ;;  %v406_v13 = vld [vmem:[%s1583_s8 + $0x2c] sm:$0xf]  ;;  %v421_v14 = vld [vmem:[%s1583_s8 + $0x48] sm:$0xf] }
  0x1f   : > { %428 = vst.msk [vmem:[#allocation2 + $0x44] sm:$0xf] %vm394_vm0, %v420_v6  ;;  %v422_v16 = vld [vmem:[%s1583_s8 + $0x4c] sm:$0xf]  ;;  %v437_v17 = vld [vmem:[%s1583_s8 + $0x68] sm:$0xf] }
  0x20   : > { %443 = vst.msk [vmem:[#allocation2 + $0x60] sm:$0xf] %vm394_vm0, %v435_v7  ;;  %v438_v19 = vld [vmem:[%s1583_s8 + $0x6c] sm:$0xf]  ;;  %v390_v20 = vld [vmem:[%s1583_s8 + $0x10] sm:$0xf] }
  0x21   : > { %444 = vst.msk [vmem:[#allocation2 + $0x64] sm:$0xf] %vm394_vm0, %v436_v8  ;;  %v391_v22 = vld [vmem:[%s1583_s8 + $0x14] sm:$0xf]  ;;  %v407_v23 = vld [vmem:[%s1583_s8 + $0x30] sm:$0xf] }
  0x22   : > { %v1236_v11 = vld [vmem:[#allocation2] sm:$0xff]  ;;  %397 = vst.msk [vmem:[#allocation2 + $0x8] sm:$0xf] %vm394_vm0, %v388_v9  ;;  %v408_v24 = vld [vmem:[%s1583_s8 + $0x34] sm:$0xf] }
  0x23   : > { %1213 = vmatmul.msk.bf16.vlgmr.msra.gmra.mxu0 %vm573_vm1, %v1236_v11  ;;  %398 = vst.msk [vmem:[#allocation2 + $0xc] sm:$0xf] %vm394_vm0, %v389_v10  ;;  %v423_v25 = vld [vmem:[%s1583_s8 + $0x50] sm:$0xf]  ;;  %v424_v26 = vld [vmem:[%s1583_s8 + $0x54] sm:$0xf] }
  0x24   : > { %v1240_v15 = vld [vmem:[#allocation2 + $0x20] sm:$0xff]  ;;  %413 = vst.msk [vmem:[#allocation2 + $0x28] sm:$0xf] %vm394_vm0, %v405_v12  ;;  %v439_v27 = vld [vmem:[%s1583_s8 + $0x70] sm:$0xf] }
  0x25   : > { %414 = vst.msk [vmem:[#allocation2 + $0x2c] sm:$0xf] %vm394_vm0, %v406_v13  ;;  %1217 = vmatmul.msk.bf16.vlgmr.msra.gmra.mxu1 %vm573_vm1, %v1240_v15  ;;  %v440_v28 = vld [vmem:[%s1583_s8 + $0x74] sm:$0xf]  ;;  %v392_v30 = vld [vmem:[%s1583_s8 + $0x18] sm:$0xf] }
  0x26   : > { %v1244_v18 = vld [vmem:[#allocation2 + $0x40] sm:$0xff]  ;;  %429 = vst.msk [vmem:[#allocation2 + $0x48] sm:$0xf] %vm394_vm0, %v421_v14  ;;  %v393_v31 = vld [vmem:[%s1583_s8 + $0x1c] sm:$0xf] }
  0x27   : > { %430 = vst.msk [vmem:[#allocation2 + $0x4c] sm:$0xf] %vm394_vm0, %v422_v16  ;;  %1221 = vmatmul.msk.bf16.vlgmr.msra.gmra.mxu2 %vm573_vm1, %v1244_v18  ;;  %v409_v32 = vld [vmem:[%s1583_s8 + $0x38] sm:$0xf]  ;;  %v410_v34 = vld [vmem:[%s1583_s8 + $0x3c] sm:$0xf] }
  0x28   : > { %v1248_v21 = vld [vmem:[#allocation2 + $0x60] sm:$0xff]  ;;  %445 = vst.msk [vmem:[#allocation2 + $0x68] sm:$0xf] %vm394_vm0, %v437_v17  ;;  %v425_v35 = vld [vmem:[%s1583_s8 + $0x58] sm:$0xf] }
  0x29   : > { %446 = vst.msk [vmem:[#allocation2 + $0x6c] sm:$0xf] %vm394_vm0, %v438_v19  ;;  %1225 = vmatmul.msk.bf16.vlgmr.msra.gmra.mxu3 %vm573_vm1, %v1248_v21  ;;  %v426_v37 = vld [vmem:[%s1583_s8 + $0x5c] sm:$0xf]  ;;  %v441_v38 = vld [vmem:[%s1583_s8 + $0x78] sm:$0xf] }
  0x2a   : > { %399 = vst.msk [vmem:[#allocation2 + $0x10] sm:$0xf] %vm394_vm0, %v390_v20  ;;  %v1237_v29 = vld [vmem:[#allocation2 + $0x8] sm:$0xff]  ;;  %v442_v40 = vld [vmem:[%s1583_s8 + $0x7c] sm:$0xf] }
  0x2b   : > { %400 = vst.msk [vmem:[#allocation2 + $0x14] sm:$0xf] %vm394_vm0, %v391_v22 }
  0x2c   : > { %415 = vst.msk [vmem:[#allocation2 + $0x30] sm:$0xf] %vm394_vm0, %v407_v23  ;;  %v1241_v33 = vld [vmem:[#allocation2 + $0x28] sm:$0xff] }
  0x2d   : > { %416 = vst.msk [vmem:[#allocation2 + $0x34] sm:$0xf] %vm394_vm0, %v408_v24 }
  0x2e   : > { %431 = vst.msk [vmem:[#allocation2 + $0x50] sm:$0xf] %vm394_vm0, %v423_v25  ;;  %v1245_v36 = vld [vmem:[#allocation2 + $0x48] sm:$0xff] }
  0x2f   : > { %432 = vst.msk [vmem:[#allocation2 + $0x54] sm:$0xf] %vm394_vm0, %v424_v26 }
  0x30   : > { %447 = vst.msk [vmem:[#allocation2 + $0x70] sm:$0xf] %vm394_vm0, %v439_v27  ;;  %v1249_v39 = vld [vmem:[#allocation2 + $0x68] sm:$0xff] }
  0x31   : > { %448 = vst.msk [vmem:[#allocation2 + $0x74] sm:$0xf] %vm394_vm0, %v440_v28 }
  0x32   : > { %401 = vst.msk [vmem:[#allocation2 + $0x18] sm:$0xf] %vm394_vm0, %v392_v30  ;;  %v1238_v41 = vld [vmem:[#allocation2 + $0x10] sm:$0xff] }
  0x33   : > { %1214 = vmatmul.msk.bf16.gmra.mxu0 %vm573_vm1, %v1237_v29  ;;  %402 = vst.msk [vmem:[#allocation2 + $0x1c] sm:$0xf] %vm394_vm0, %v393_v31 }
  0x34   : > { %417 = vst.msk [vmem:[#allocation2 + $0x38] sm:$0xf] %vm394_vm0, %v409_v32  ;;  %v1242_v42 = vld [vmem:[#allocation2 + $0x30] sm:$0xff] }
  0x35   : > { %418 = vst.msk [vmem:[#allocation2 + $0x3c] sm:$0xf] %vm394_vm0, %v410_v34  ;;  %1218 = vmatmul.msk.bf16.gmra.mxu1 %vm573_vm1, %v1241_v33 }
  0x36   : > { %433 = vst.msk [vmem:[#allocation2 + $0x58] sm:$0xf] %vm394_vm0, %v425_v35  ;;  %v1246_v43 = vld [vmem:[#allocation2 + $0x50] sm:$0xff] }
  0x37   : > { %434 = vst.msk [vmem:[#allocation2 + $0x5c] sm:$0xf] %vm394_vm0, %v426_v37  ;;  %1222 = vmatmul.msk.bf16.gmra.mxu2 %vm573_vm1, %v1245_v36 }
  0x38   : > { %449 = vst.msk [vmem:[#allocation2 + $0x78] sm:$0xf] %vm394_vm0, %v441_v38  ;;  %v1250_v44 = vld [vmem:[#allocation2 + $0x70] sm:$0xff] }
  0x39   : > { %450 = vst.msk [vmem:[#allocation2 + $0x7c] sm:$0xf] %vm394_vm0, %v442_v40  ;;  %1226 = vmatmul.msk.bf16.gmra.mxu3 %vm573_vm1, %v1249_v39 }
  0x3a   : > { %v1239_v45 = vld [vmem:[#allocation2 + $0x18] sm:$0xff] }
  0x3c   : > { %v1243_v46 = vld [vmem:[#allocation2 + $0x38] sm:$0xff] }
  0x3e   : > { %v1247_v47 = vld [vmem:[#allocation2 + $0x58] sm:$0xff] }
  0x40   : > { %v1251_v48 = vld [vmem:[#allocation2 + $0x78] sm:$0xff] }
  0x43   : > { %1215 = vmatmul.msk.bf16.gmra.mxu0 %vm573_vm1, %v1238_v41 }
  0x45   : > { %1219 = vmatmul.msk.bf16.gmra.mxu1 %vm573_vm1, %v1242_v42 }
  0x47   : > { %1223 = vmatmul.msk.bf16.gmra.mxu2 %vm573_vm1, %v1246_v43 }
  0x49   : > { %1227 = vmatmul.msk.bf16.gmra.mxu3 %vm573_vm1, %v1250_v44 }
  0x53   : > { %1216 = vmatmul.msk.bf16.gmra.mxu0 %vm573_vm1, %v1239_v45 }
  0x55   : > { %1220 = vmatmul.msk.bf16.gmra.mxu1 %vm573_vm1, %v1243_v46 }
  0x57   : > { %1224 = vmatmul.msk.bf16.gmra.mxu2 %vm573_vm1, %v1247_v47 }
  0x59   : > { %1228 = vmatmul.msk.bf16.gmra.mxu3 %vm573_vm1, %v1251_v48 }
  0xa0   : > { %v631_v49 = vpop.f32.mrf.mxu0 }
  0xa1   : > { %v779_v52 = vadd.f32 %v1668_v50, %v631_v49 }
  0xa2   : > { %v651_v51 = vpop.f32.mrf.mxu1 }
  0xa3   : > { %v843_v54 = vmul.f32 0.1, %v779_v52  ;;  %v787_v55 = vadd.f32 %v1668_v50, %v651_v51  ;;  %vm811_vm2 = vcmp.ge.f32.partialorder %v779_v52, 0.0 }
  0xa5   : > { %v875_v61 = vsel %vm811_vm2, %v779_v52, %v843_v54  ;;  %v851_v62 = vmul.f32 0.1, %v787_v55  ;;  %vm819_vm4 = vcmp.ge.f32.partialorder %v787_v55, 0.0 }
  0xa7   : > { %v883_v5 = vsel %vm819_vm4, %v787_v55, %v851_v62 }
  0xa8   : > { %v633_v53 = vpop.f32.mrf.mxu0 }
  0xa9   : > { %v780_v56 = vadd.f32 %v1668_v50, %v633_v53 }
  0xaa   : > { %v671_v57 = vpop.f32.mrf.mxu2  ;;  %v653_v59 = vpop.f32.mrf.mxu1 }
  0xab   : > { %vm812_vm3 = vcmp.ge.f32.partialorder %v780_v56, 0.0  ;;  %v844_v58 = vmul.f32 0.1, %v780_v56  ;;  %v788_v60 = vadd.f32 %v1668_v50, %v653_v59  ;;  %v795_v3 = vadd.f32 %v1668_v50, %v671_v57 }
  0xac   : > { %v691_v63 = vpop.f32.mrf.mxu3 }
  0xad   : > { %v876_v0 = vsel %vm812_vm3, %v780_v56, %v844_v58  ;;  %vm820_vm5 = vcmp.ge.f32.partialorder %v788_v60, 0.0  ;;  %v852_v2 = vmul.f32 0.1, %v788_v60  ;;  %v803_v7 = vadd.f32 %v1668_v50, %v691_v63 }
  0xae   : > { %v1257_v1 = vpack.c.bf16 %v876_v0, %v875_v61  ;;  %v859_v11 = vmul.f32 0.1, %v795_v3  ;;  %vm827_vm6 = vcmp.ge.f32.partialorder %v795_v3, 0.0 }
  0xaf   : > { %v884_v6 = vsel %vm820_vm5, %v788_v60, %v852_v2  ;;  %v867_v15 = vmul.f32 0.1, %v803_v7  ;;  %vm835_vm8 = vcmp.ge.f32.partialorder %v803_v7, 0.0 }
  0xb0   : > { %1258 = vst [vmem:[%s1678_s13] sm:$0xff] %v1257_v1   ;;  %v636_v4 = vpop.f32.mrf.mxu0  ;;  %v1277_v8 = vpack.c.bf16 %v884_v6, %v883_v5  ;;  %v891_v18 = vsel %vm827_vm6, %v795_v3, %v859_v11 }
  0xb1   : > { %v781_v14 = vadd.f32 %v1668_v50, %v636_v4  ;;  %v899_v26 = vsel %vm835_vm8, %v803_v7, %v867_v15 }
  0xb2   : > { %v673_v9 = vpop.f32.mrf.mxu2  ;;  %v656_v10 = vpop.f32.mrf.mxu1  ;;  %1337 = vst [vmem:[%s1678_s13 + $0x20] sm:$0xff] %v1277_v8  }
  0xb3   : > { %v796_v12 = vadd.f32 %v1668_v50, %v673_v9  ;;  %v845_v23 = vmul.f32 0.1, %v781_v14  ;;  %v789_v24 = vadd.f32 %v1668_v50, %v656_v10  ;;  %vm813_vm10 = vcmp.ge.f32.partialorder %v781_v14, 0.0 }
  0xb4   : > { %v693_v13 = vpop.f32.mrf.mxu3 }
  0xb5   : > { %vm828_vm7 = vcmp.ge.f32.partialorder %v796_v12, 0.0  ;;  %v860_v16 = vmul.f32 0.1, %v796_v12  ;;  %v804_v17 = vadd.f32 %v1668_v50, %v693_v13  ;;  %v877_v33 = vsel %vm813_vm10, %v781_v14, %v845_v23 }
  0xb6   : > { %v853_v34 = vmul.f32 0.1, %v789_v24  ;;  %vm821_vm12 = vcmp.ge.f32.partialorder %v789_v24, 0.0 }
  0xb7   : > { %v892_v19 = vsel %vm828_vm7, %v796_v12, %v860_v16  ;;  %vm836_vm9 = vcmp.ge.f32.partialorder %v804_v17, 0.0  ;;  %v868_v20 = vmul.f32 0.1, %v804_v17 }
  0xb8   : > { %v638_v21 = vpop.f32.mrf.mxu0  ;;  %v1297_v22 = vpack.c.bf16 %v892_v19, %v891_v18  ;;  %v885_v41 = vsel %vm821_vm12, %v789_v24, %v853_v34 }
  0xb9   : > { %v782_v25 = vadd.f32 %v1668_v50, %v638_v21  ;;  %v900_v27 = vsel %vm836_vm9, %v804_v17, %v868_v20 }
  0xba   : > { %1341 = vst [vmem:[%s1678_s13 + $0x40] sm:$0xff] %v1297_v22   ;;  %v1317_v28 = vpack.c.bf16 %v900_v27, %v899_v26  ;;  %v676_v29 = vpop.f32.mrf.mxu2  ;;  %v658_v31 = vpop.f32.mrf.mxu1 }
  0xbb   : > { %vm814_vm11 = vcmp.ge.f32.partialorder %v782_v25, 0.0  ;;  %v846_v30 = vmul.f32 0.1, %v782_v25  ;;  %v790_v32 = vadd.f32 %v1668_v50, %v658_v31  ;;  %v797_v39 = vadd.f32 %v1668_v50, %v676_v29 }
  0xbc   : > { %1345 = vst [vmem:[%s1678_s13 + $0x60] sm:$0xff] %v1317_v28   ;;  %v696_v35 = vpop.f32.mrf.mxu3 }
  0xbd   : > { %v878_v36 = vsel %vm814_vm11, %v782_v25, %v846_v30  ;;  %vm822_vm13 = vcmp.ge.f32.partialorder %v790_v32, 0.0  ;;  %v854_v38 = vmul.f32 0.1, %v790_v32  ;;  %v805_v43 = vadd.f32 %v1668_v50, %v696_v35 }
  0xbe   : > { %v1262_v37 = vpack.c.bf16 %v878_v36, %v877_v33  ;;  %v861_v47 = vmul.f32 0.1, %v797_v39  ;;  %vm829_vm14 = vcmp.ge.f32.partialorder %v797_v39, 0.0 }
  0xbf   : > { %v886_v42 = vsel %vm822_vm13, %v790_v32, %v854_v38  ;;  %v869_v52 = vmul.f32 0.1, %v805_v43  ;;  %vm837_vm0 = vcmp.ge.f32.partialorder %v805_v43, 0.0 }
  0xc0   : > { %1334 = vst [vmem:[%s1678_s13 + $0x8] sm:$0xff] %v1262_v37   ;;  %v641_v40 = vpop.f32.mrf.mxu0  ;;  %v1282_v44 = vpack.c.bf16 %v886_v42, %v885_v41  ;;  %v893_v55 = vsel %vm829_vm14, %v797_v39, %v861_v47 }
  0xc1   : > { %v783_v51 = vadd.f32 %v1668_v50, %v641_v40  ;;  %v901_v63 = vsel %vm837_vm0, %v805_v43, %v869_v52 }
  0xc2   : > { %v678_v45 = vpop.f32.mrf.mxu2  ;;  %v661_v46 = vpop.f32.mrf.mxu1  ;;  %1338 = vst [vmem:[%s1678_s13 + $0x28] sm:$0xff] %v1282_v44  }
  0xc3   : > { %v798_v48 = vadd.f32 %v1668_v50, %v678_v45  ;;  %v847_v60 = vmul.f32 0.1, %v783_v51  ;;  %v791_v61 = vadd.f32 %v1668_v50, %v661_v46  ;;  %vm815_vm2 = vcmp.ge.f32.partialorder %v783_v51, 0.0 }
  0xc4   : > { %v698_v49 = vpop.f32.mrf.mxu3 }
  0xc5   : > { %vm830_vm15 = vcmp.ge.f32.partialorder %v798_v48, 0.0  ;;  %v862_v53 = vmul.f32 0.1, %v798_v48  ;;  %v806_v54 = vadd.f32 %v1668_v50, %v698_v49  ;;  %v879_v6 = vsel %vm815_vm2, %v783_v51, %v847_v60 }
  0xc6   : > { %v855_v7 = vmul.f32 0.1, %v791_v61  ;;  %vm823_vm4 = vcmp.ge.f32.partialorder %v791_v61, 0.0 }
  0xc7   : > { %v894_v56 = vsel %vm830_vm15, %v798_v48, %v862_v53  ;;  %vm838_vm1 = vcmp.ge.f32.partialorder %v806_v54, 0.0  ;;  %v870_v57 = vmul.f32 0.1, %v806_v54 }
  0xc8   : > { %v643_v58 = vpop.f32.mrf.mxu0  ;;  %v1302_v59 = vpack.c.bf16 %v894_v56, %v893_v55  ;;  %v887_v14 = vsel %vm823_vm4, %v791_v61, %v855_v7 }
  0xc9   : > { %v784_v62 = vadd.f32 %v1668_v50, %v643_v58  ;;  %v902_v0 = vsel %vm838_vm1, %v806_v54, %v870_v57 }
  0xca   : > { %1342 = vst [vmem:[%s1678_s13 + $0x48] sm:$0xff] %v1302_v59   ;;  %v1322_v1 = vpack.c.bf16 %v902_v0, %v901_v63  ;;  %v681_v2 = vpop.f32.mrf.mxu2  ;;  %v663_v4 = vpop.f32.mrf.mxu1 }
  0xcb   : > { %vm816_vm3 = vcmp.ge.f32.partialorder %v784_v62, 0.0  ;;  %v848_v3 = vmul.f32 0.1, %v784_v62  ;;  %v792_v5 = vadd.f32 %v1668_v50, %v663_v4  ;;  %v799_v12 = vadd.f32 %v1668_v50, %v681_v2 }
  0xcc   : > { %1346 = vst [vmem:[%s1678_s13 + $0x68] sm:$0xff] %v1322_v1   ;;  %v701_v8 = vpop.f32.mrf.mxu3 }
  0xcd   : > { %v880_v9 = vsel %vm816_vm3, %v784_v62, %v848_v3  ;;  %vm824_vm5 = vcmp.ge.f32.partialorder %v792_v5, 0.0  ;;  %v856_v11 = vmul.f32 0.1, %v792_v5  ;;  %v807_v16 = vadd.f32 %v1668_v50, %v701_v8 }
  0xce   : > { %v1267_v10 = vpack.c.bf16 %v880_v9, %v879_v6  ;;  %v863_v20 = vmul.f32 0.1, %v799_v12  ;;  %vm831_vm6 = vcmp.ge.f32.partialorder %v799_v12, 0.0 }
  0xcf   : > { %v888_v15 = vsel %vm824_vm5, %v792_v5, %v856_v11  ;;  %v871_v24 = vmul.f32 0.1, %v807_v16  ;;  %vm839_vm8 = vcmp.ge.f32.partialorder %v807_v16, 0.0 }
  0xd0   : > { %1335 = vst [vmem:[%s1678_s13 + $0x10] sm:$0xff] %v1267_v10   ;;  %v646_v13 = vpop.f32.mrf.mxu0  ;;  %v1287_v17 = vpack.c.bf16 %v888_v15, %v887_v14  ;;  %v895_v27 = vsel %vm831_vm6, %v799_v12, %v863_v20 }
  0xd1   : > { %v785_v23 = vadd.f32 %v1668_v50, %v646_v13  ;;  %v903_v35 = vsel %vm839_vm8, %v807_v16, %v871_v24 }
  0xd2   : > { %v683_v18 = vpop.f32.mrf.mxu2  ;;  %v666_v19 = vpop.f32.mrf.mxu1  ;;  %1339 = vst [vmem:[%s1678_s13 + $0x30] sm:$0xff] %v1287_v17  }
  0xd3   : > { %v800_v21 = vadd.f32 %v1668_v50, %v683_v18  ;;  %v849_v32 = vmul.f32 0.1, %v785_v23  ;;  %v793_v33 = vadd.f32 %v1668_v50, %v666_v19  ;;  %vm817_vm10 = vcmp.ge.f32.partialorder %v785_v23, 0.0 }
  0xd4   : > { %v703_v22 = vpop.f32.mrf.mxu3 }
  0xd5   : > { %vm832_vm7 = vcmp.ge.f32.partialorder %v800_v21, 0.0  ;;  %v864_v25 = vmul.f32 0.1, %v800_v21  ;;  %v808_v26 = vadd.f32 %v1668_v50, %v703_v22  ;;  %v881_v42 = vsel %vm817_vm10, %v785_v23, %v849_v32 }
  0xd6   : > { %v857_v43 = vmul.f32 0.1, %v793_v33  ;;  %vm825_vm12 = vcmp.ge.f32.partialorder %v793_v33, 0.0 }
  0xd7   : > { %v896_v28 = vsel %vm832_vm7, %v800_v21, %v864_v25  ;;  %vm840_vm9 = vcmp.ge.f32.partialorder %v808_v26, 0.0  ;;  %v872_v29 = vmul.f32 0.1, %v808_v26 }
  0xd8   : > { %v648_v30 = vpop.f32.mrf.mxu0  ;;  %v1307_v31 = vpack.c.bf16 %v896_v28, %v895_v27  ;;  %v889_v49 = vsel %vm825_vm12, %v793_v33, %v857_v43 }
  0xd9   : > { %v786_v34 = vadd.f32 %v1668_v50, %v648_v30  ;;  %v904_v36 = vsel %vm840_vm9, %v808_v26, %v872_v29 }
  0xda   : > { %1343 = vst [vmem:[%s1678_s13 + $0x50] sm:$0xff] %v1307_v31   ;;  %v1327_v37 = vpack.c.bf16 %v904_v36, %v903_v35  ;;  %v686_v38 = vpop.f32.mrf.mxu2  ;;  %v668_v40 = vpop.f32.mrf.mxu1 }
  0xdb   : > { %vm818_vm11 = vcmp.ge.f32.partialorder %v786_v34, 0.0  ;;  %v850_v39 = vmul.f32 0.1, %v786_v34  ;;  %v794_v41 = vadd.f32 %v1668_v50, %v668_v40  ;;  %v801_v48 = vadd.f32 %v1668_v50, %v686_v38 }
  0xdc   : > { %1347 = vst [vmem:[%s1678_s13 + $0x70] sm:$0xff] %v1327_v37   ;;  %v706_v44 = vpop.f32.mrf.mxu3 }
  0xdd   : > { %v882_v45 = vsel %vm818_vm11, %v786_v34, %v850_v39  ;;  %vm826_vm13 = vcmp.ge.f32.partialorder %v794_v41, 0.0  ;;  %v858_v47 = vmul.f32 0.1, %v794_v41  ;;  %v809_v52 = vadd.f32 %v1668_v50, %v706_v44 }
  0xde   : > { %v1272_v46 = vpack.c.bf16 %v882_v45, %v881_v42  ;;  %v865_v55 = vmul.f32 0.1, %v801_v48  ;;  %vm833_vm14 = vcmp.ge.f32.partialorder %v801_v48, 0.0 }
  0xdf   : > { %v890_v51 = vsel %vm826_vm13, %v794_v41, %v858_v47  ;;  %v873_v58 = vmul.f32 0.1, %v809_v52  ;;  %vm841_vm0 = vcmp.ge.f32.partialorder %v809_v52, 0.0 }
  0xe0   : > { %1336 = vst [vmem:[%s1678_s13 + $0x18] sm:$0xff] %v1272_v46   ;;  %v1292_v53 = vpack.c.bf16 %v890_v51, %v889_v49  ;;  %v897_v61 = vsel %vm833_vm14, %v801_v48, %v865_v55 }
  0xe1   : > { %v905_v1 = vsel %vm841_vm0, %v809_v52, %v873_v58 }
  0xe2   : > { %v688_v54 = vpop.f32.mrf.mxu2  ;;  %1340 = vst [vmem:[%s1678_s13 + $0x38] sm:$0xff] %v1292_v53  }
  0xe3   : > { %v802_v56 = vadd.f32 %v1668_v50, %v688_v54 }
  0xe4   : > { %v708_v57 = vpop.f32.mrf.mxu3 }
  0xe5   : > { %vm834_vm15 = vcmp.ge.f32.partialorder %v802_v56, 0.0  ;;  %v866_v59 = vmul.f32 0.1, %v802_v56  ;;  %v810_v60 = vadd.f32 %v1668_v50, %v708_v57 }
  0xe7   : > { %v898_v62 = vsel %vm834_vm15, %v802_v56, %v866_v59  ;;  %vm842_vm1 = vcmp.ge.f32.partialorder %v810_v60, 0.0  ;;  %v874_v63 = vmul.f32 0.1, %v810_v60 }
  0xe8   : > { %v1312_v0 = vpack.c.bf16 %v898_v62, %v897_v61 }
  0xe9   : > { %v906_v2 = vsel %vm842_vm1, %v810_v60, %v874_v63 }
  0xea   : > { %1344 = vst [vmem:[%s1678_s13 + $0x58] sm:$0xff] %v1312_v0   ;;  %v1332_v3 = vpack.c.bf16 %v906_v2, %v905_v1 }
  0xec   : > { %1348 = vst [vmem:[%s1678_s13 + $0x78] sm:$0xff] %v1332_v3  }
  0xed   : > { %1440 = shalt.err (!%p1437_p5)
}
  0xee   : > { %s1493_s10 = smov 64   ;;  %s1494_s11 = smov 4  }
  0xef   : > { %1354 = dma.vmem_to_hbm [thread:$0]  (%p1560_p4), %s989_s18, 2048, %s991_s25, %s972_s28, %s1493_s10, %s1493_s10, %s1494_s11  }
  0xf0 PF: > { %p1361_p6 = scmp.ge.s32.totalorder %s1491_s19, 2  ;;  %s1005_s12 = sand.u32 1, %s1471_s15  }
  0xf1   : > { %s1006_s13 = scalar_lea.sflag [#allocation5], %s1005_s12 }
  0xf2   : > { %p1357_p7 = pnand %p1361_p6, %p1567_p8 }
  0xf4   : > { %p1358_p9 = pneg %p1357_p7 }
  0xf6   : > { %1466 = dma.done.wait (%p1358_p9), %s1006_s13, 2048  }
  0xf7   : > { %1468 = vsyncadd (%p1358_p9), %s1006_s13, 4294965248  ;;  %s17_s19 = sadd.s32 1, %s1491_s19   ;;  %s1769_s15 = smov %s1475_s16 }
  0xf8   : > { %p14_p10 = scmp.ge.s32.totalorder %s17_s19, 4   ;;  %s1770_s16 = smov %s1479_s17 }
  0xf9   : > { %s1771_s17 = smov %s1573_s27  ;;  %s1772_s18 = smov %s1487_s1 }
  0xfa   : > { %s1773_s1 = smov %s1775_s22  ;;  %16 = sbr.rel (!%p14_p10) target bundleno = 4 (0x4), region = 80 }
  0xff   :  { %1012 = vsyncpa [#allocation5], 1 }
 0x100   :  { %1014 = vsyncpa [#allocation5 + $0x1], 1 }

</bundles_post_ra>
